<compile_context>
chip_gen: v7x
topology: tpu7x:2x2x1
jax: 0.10.0
libtpu: 0.0.40
codegen_flags: <defaults>
</compile_context>

<pallas_src>
import jax
import jax.numpy as jnp
from jax.experimental import pallas as pl
from jax.experimental.pallas import tpu as pltpu


def mlp_kernel(x_ref, w1_ref, b1_ref, w2_ref, b2_ref, out_ref, emb_ref):
    # Layer 1: (TB, D) @ (D, E) + b1, ReLU.
    x = x_ref[...].astype(jnp.float32)
    h = jnp.dot(x, w1_ref[...], preferred_element_type=jnp.float32) + b1_ref[...]
    emb = jnp.maximum(h, 0.0)
    # Layer 2: (TB, E) @ (E, C) + b2.
    out = jnp.dot(emb, w2_ref[...], preferred_element_type=jnp.float32) + b2_ref[...]
    emb_ref[...] = emb.astype(emb_ref.dtype)
    out_ref[...] = out.astype(out_ref.dtype)


def openml_net_forward(x, params, *, block_b=128):
    """Mirrors openml_Net.forward: returns (out, emb).

    x: any shape whose trailing dims flatten to `dim` (like x.view(-1, dim)).
    params: dict with w1 (dim, emb), b1 (1, emb), w2 (emb, C), b2 (1, C).
    """
    w1, b1, w2, b2 = params["w1"], params["b1"], params["w2"], params["b2"]
    dim, emb_dim = w1.shape
    num_classes = w2.shape[1]

    x2d = x.reshape(-1, dim)
    B = x2d.shape[0]

    # Batch tiling: full-extent block for small B, otherwise block_b-sized
    # tiles (padded up so the grid divides evenly).
    if B <= block_b:
        tb, Bp = B, B
    else:
        tb = block_b
        Bp = pl.cdiv(B, tb) * tb
        if Bp != B:
            x2d = jnp.pad(x2d, ((0, Bp - B), (0, 0)))

    grid = (Bp // tb,)

    out, emb = pl.pallas_call(
        mlp_kernel,
        out_shape=(
            jax.ShapeDtypeStruct((Bp, num_classes), jnp.float32),
            jax.ShapeDtypeStruct((Bp, emb_dim), jnp.float32),
        ),
        grid_spec=pltpu.PrefetchScalarGridSpec(
            num_scalar_prefetch=0,
            grid=grid,
            in_specs=[
                pl.BlockSpec((tb, dim), lambda i: (i, 0)),        # x tile
                pl.BlockSpec((dim, emb_dim), lambda i: (0, 0)),   # w1 (resident)
                pl.BlockSpec((1, emb_dim), lambda i: (0, 0)),     # b1
                pl.BlockSpec((emb_dim, num_classes), lambda i: (0, 0)),  # w2
                pl.BlockSpec((1, num_classes), lambda i: (0, 0)),        # b2
            ],
            out_specs=(
                pl.BlockSpec((tb, num_classes), lambda i: (i, 0)),
                pl.BlockSpec((tb, emb_dim), lambda i: (i, 0)),
            ),
        ),
        compiler_params=pltpu.CompilerParams(
            dimension_semantics=("parallel",),
        ),
    )(x2d, w1, b1, w2, b2)

    return out[:B], emb[:B]


def init_params(key, dim, emb_dim, num_classes):
    """Mimic nn.Linear init: uniform(-1/sqrt(fan_in), +1/sqrt(fan_in)).
    Weights stored pre-transposed as (in_features, out_features)."""
    k1, k2, k3, k4 = jax.random.split(key, 4)
    b1_bound = 1.0 / jnp.sqrt(jnp.float32(dim))
    b2_bound = 1.0 / jnp.sqrt(jnp.float32(emb_dim))
    return {
        "w1": jax.random.uniform(k1, (dim, emb_dim), jnp.float32, -b1_bound, b1_bound),
        "b1": jax.random.uniform(k2, (1, emb_dim), jnp.float32, -b1_bound, b1_bound),
        "w2": jax.random.uniform(k3, (emb_dim, num_classes), jnp.float32, -b2_bound, b2_bound),
        "b2": jax.random.uniform(k4, (1, num_classes), jnp.float32, -b2_bound, b2_bound),
    }


def reference_forward(x, params):
    """Pure-JAX mirror of the PyTorch forward (for correctness checking)."""
    dim = params["w1"].shape[0]
    x2d = x.reshape(-1, dim).astype(jnp.float32)
    emb = jax.nn.relu(x2d @ params["w1"] + params["b1"])
    out = emb @ params["w2"] + params["b2"]
    return out, emb


if __name__ == "__main__":
    # Small shapes consistent with the module: x.view(-1, dim) with
    # dim = 8*8 = 64, embSize = 128, num_classes = 10, batch = 16.
    batch, h, w = 16, 8, 8
    dim = h * w
    emb_dim = 128
    num_classes = 10

    root = jax.random.PRNGKey(0)
    k_x, k_p = jax.random.split(root)
    x = jax.random.normal(k_x, (batch, 1, h, w), jnp.float32)
    params = init_params(k_p, dim, emb_dim, num_classes)

    # block_b=8 so the grid actually has >1 step at this toy batch size.
    out, emb = openml_net_forward(x, params, block_b=8)
    out = jax.block_until_ready(out)
    emb = jax.block_until_ready(emb)

    out_ref, emb_ref = reference_forward(x, params)
    assert out.shape == (batch, num_classes)
    assert emb.shape == (batch, emb_dim)
    assert jnp.allclose(out, out_ref, atol=1e-5, rtol=1e-5)
    assert jnp.allclose(emb, emb_ref, atol=1e-5, rtol=1e-5)

    print("KERNEL_OK")
</pallas_src>

<mosaic_0001>
module attributes {stable_mosaic.version = 11 : i64} {
  func.func @mlp_kernel(%arg0: i32, %arg1: memref<8x64xf32, #tpu.memory_space<vmem>>, %arg2: memref<64x128xf32, #tpu.memory_space<vmem>>, %arg3: memref<1x128xf32, #tpu.memory_space<vmem>>, %arg4: memref<128x10xf32, #tpu.memory_space<vmem>>, %arg5: memref<1x10xf32, #tpu.memory_space<vmem>>, %arg6: memref<8x10xf32, #tpu.memory_space<vmem>>, %arg7: memref<8x128xf32, #tpu.memory_space<vmem>>) attributes {dimension_semantics = [#tpu.dimension_semantics<parallel>], iteration_bounds = array<i64: 2>, scalar_prefetch = 0 : i64, scratch_operands = 0 : i64, tpu.core_type = #tpu.core_type<tc>, window_params = [{transform_indices = @transform_0, window_bounds = array<i64: 8, 64>}, {pipeline_mode = #tpu.pipeline_mode<synchronous>, transform_indices = @transform_1, window_bounds = array<i64: 64, 128>}, {pipeline_mode = #tpu.pipeline_mode<synchronous>, transform_indices = @transform_2, window_bounds = array<i64: 1, 128>}, {pipeline_mode = #tpu.pipeline_mode<synchronous>, transform_indices = @transform_3, window_bounds = array<i64: 128, 10>}, {pipeline_mode = #tpu.pipeline_mode<synchronous>, transform_indices = @transform_4, window_bounds = array<i64: 1, 10>}, {transform_indices = @transform_5, window_bounds = array<i64: 8, 10>}, {transform_indices = @transform_6, window_bounds = array<i64: 8, 128>}]} {
    %c0 = arith.constant 0 : index
    %c0_0 = arith.constant 0 : index
    %0 = vector.load %arg1[%c0, %c0_0] : memref<8x64xf32, #tpu.memory_space<vmem>>, vector<8x64xf32>
    %c0_1 = arith.constant 0 : index
    %c0_2 = arith.constant 0 : index
    %1 = vector.load %arg2[%c0_1, %c0_2] : memref<64x128xf32, #tpu.memory_space<vmem>>, vector<64x128xf32>
    %cst = arith.constant dense<0.000000e+00> : vector<8x128xf32>
    %2 = tpu.matmul %0, %1, %cst {dimension_numbers = #tpu.dot_dimension_numbers<[1], [0], [0], [1], [0, 0, 1, 1], [], []>} : vector<8x64xf32>, vector<64x128xf32>, vector<8x128xf32> -> vector<8x128xf32>
    %c0_3 = arith.constant 0 : index
    %c0_4 = arith.constant 0 : index
    %3 = vector.load %arg3[%c0_3, %c0_4] : memref<1x128xf32, #tpu.memory_space<vmem>>, vector<1x128xf32>
    %4 = vector.broadcast %3 : vector<1x128xf32> to vector<8x128xf32>
    %5 = arith.addf %2, %4 : vector<8x128xf32>
    %cst_5 = arith.constant 0.000000e+00 : f32
    %6 = vector.broadcast %cst_5 : f32 to vector<8x128xf32>
    %7 = arith.maximumf %5, %6 : vector<8x128xf32>
    %c0_6 = arith.constant 0 : index
    %c0_7 = arith.constant 0 : index
    %8 = vector.load %arg4[%c0_6, %c0_7] : memref<128x10xf32, #tpu.memory_space<vmem>>, vector<128x10xf32>
    %cst_8 = arith.constant dense<0.000000e+00> : vector<8x10xf32>
    %9 = tpu.matmul %7, %8, %cst_8 {dimension_numbers = #tpu.dot_dimension_numbers<[1], [0], [0], [1], [0, 0, 1, 1], [], []>} : vector<8x128xf32>, vector<128x10xf32>, vector<8x10xf32> -> vector<8x10xf32>
    %c0_9 = arith.constant 0 : index
    %c0_10 = arith.constant 0 : index
    %10 = vector.load %arg5[%c0_9, %c0_10] : memref<1x10xf32, #tpu.memory_space<vmem>>, vector<1x10xf32>
    %11 = vector.broadcast %10 : vector<1x10xf32> to vector<8x10xf32>
    %12 = arith.addf %9, %11 : vector<8x10xf32>
    %c0_11 = arith.constant 0 : index
    %c0_12 = arith.constant 0 : index
    %13 = vector.load %arg7[%c0_11, %c0_12] : memref<8x128xf32, #tpu.memory_space<vmem>>, vector<8x128xf32>
    tpu.vector_store %arg7[%c0_11, %c0_12], %7 {strides = array<i32>} : memref<8x128xf32, #tpu.memory_space<vmem>>, vector<8x128xf32>,
    %c0_13 = arith.constant 0 : index
    %c0_14 = arith.constant 0 : index
    %14 = vector.load %arg6[%c0_13, %c0_14] : memref<8x10xf32, #tpu.memory_space<vmem>>, vector<8x10xf32>
    tpu.vector_store %arg6[%c0_13, %c0_14], %12 {strides = array<i32>} : memref<8x10xf32, #tpu.memory_space<vmem>>, vector<8x10xf32>,
    return
  }
  func.func @transform_0(%arg0: i32) -> (i32, i32) {
    %c0_i32 = arith.constant 0 : i32
    %c0_i32_0 = arith.constant 0 : i32
    return %arg0, %c0_i32 : i32, i32
  }
  func.func @transform_1(%arg0: i32) -> (i32, i32) {
    %c0_i32 = arith.constant 0 : i32
    %c0_i32_0 = arith.constant 0 : i32
    %c0_i32_1 = arith.constant 0 : i32
    return %c0_i32, %c0_i32_0 : i32, i32
  }
  func.func @transform_2(%arg0: i32) -> (i32, i32) {
    %c0_i32 = arith.constant 0 : i32
    %c0_i32_0 = arith.constant 0 : i32
    %c0_i32_1 = arith.constant 0 : i32
    return %c0_i32, %c0_i32_0 : i32, i32
  }
  func.func @transform_3(%arg0: i32) -> (i32, i32) {
    %c0_i32 = arith.constant 0 : i32
    %c0_i32_0 = arith.constant 0 : i32
    %c0_i32_1 = arith.constant 0 : i32
    return %c0_i32, %c0_i32_0 : i32, i32
  }
  func.func @transform_4(%arg0: i32) -> (i32, i32) {
    %c0_i32 = arith.constant 0 : i32
    %c0_i32_0 = arith.constant 0 : i32
    %c0_i32_1 = arith.constant 0 : i32
    return %c0_i32, %c0_i32_0 : i32, i32
  }
  func.func @transform_5(%arg0: i32) -> (i32, i32) {
    %c0_i32 = arith.constant 0 : i32
    %c0_i32_0 = arith.constant 0 : i32
    return %arg0, %c0_i32 : i32, i32
  }
  func.func @transform_6(%arg0: i32) -> (i32, i32) {
    %c0_i32 = arith.constant 0 : i32
    %c0_i32_0 = arith.constant 0 : i32
    return %arg0, %c0_i32 : i32, i32
  }
}

</mosaic_0001>

<bundles_post_ra>
// kernel: tpu_custom_call.1
= control target key start
LH: loop header
LB: loop body
LE: loop exit
PB: predicated region body
PF: predicated region fallthrough
CT: control target
= control target key end

     0   :  { %12 = vsyncpa [#allocation3], 0  ;;  %s1108_s0 = inlined_call_operand.vmem [shape: f32[16,64], index: 0, kind: input, shape index: {}]   ;;  %s1109_s1 = inlined_call_operand.vmem [shape: f32[64,128], index: 1, kind: input, shape index: {}]   ;;  %s1110_s2 = inlined_call_operand.vmem [shape: f32[1,128], index: 2, kind: input, shape index: {}]   ;;  %s1111_s3 = inlined_call_operand.vmem [shape: f32[128,10], index: 3, kind: input, shape index: {}]   ;;  %s1112_s4 = inlined_call_operand.vmem [shape: f32[1,10], index: 4, kind: input, shape index: {}]   ;;  %s1113_s5 = inlined_call_operand.hbm [shape: f32[16,10], index: 5, kind: output, shape index: {0}]   ;;  %s1114_s6 = inlined_call_operand.hbm [shape: f32[16,128], index: 6, kind: output, shape index: {1}]  }
   0x1   :  { %14 = vsyncpa [#allocation3 + $0x1], 0 }
   0x2   :  { %15 = vsyncpa [#allocation5], 0 }
   0x3   :  { %17 = vsyncpa [#allocation5 + $0x1], 0  ;;  %s883_s21 = smov 0   ;;  %s885_s22 = smov 0  }
   0x4   :  { %s887_s23 = smov 0   ;;  %s889_s24 = smov 0  }
   0x5 LB: > { %s904_s25 = sadd.s32 4294967295, %s841_s24   ;;  %s568_s26 = sadd.s32 4294967294, %s841_s24   ;;  %s841_s24 = sphi %s889_s24, %s1120_s24   ;;  %s837_s23 = sphi %s887_s23, %s1119_s23   ;;  %s833_s22 = sphi %s885_s22, %s1118_s22   ;;  %s829_s21 = sphi %s883_s21, %s1117_s21  }
   0x6   : > { %s908_s27 = sadd.s32 1, %s841_s24   ;;  %s140_s28 = sadd.s32 1, %s837_s23 }
   0x7   : > { %s137_s29 = ssub.s32 %s841_s24, %s908_s27  ;;  %p150_p0 = scmp.ne.s32.totalorder %s837_s23, %s833_s22 }
   0x8   : > { %p138_p1 = scmp.eq.s32.totalorder %s137_s29, 0  ;;  %p151_p2 = scmp.eq.s32.totalorder %s904_s25, 1 }
   0x9   : > { %p156_p3 = scmp.ne.s32.totalorder %s833_s22, %s829_s21  ;;  %p157_p4 = scmp.eq.s32.totalorder %s568_s26, 1 }
   0xa   : > { %s919_s30 = scalar_select %p138_p1, %s837_s23, %s140_s28  }
   0xb   : > { %p921_p5 = por %p151_p2, %p150_p0  ;;  %p925_p6 = por %p157_p4, %p156_p3 }
   0xc   : > { %p571_p7 = scmp.ge.s32.totalorder %s841_s24, 1  ;;  %p220_p8 = scmp.lt.s32.totalorder %s841_s24, 3 }
   0xe   : > { %p221_p9 = pnand %p571_p7, %p220_p8 }
   0xf   : > { %v259_v0 = vld [vmem:[%s1109_s1] sm:$0xff] (!%p221_p9)  ;;  %v260_v1 = vld [vmem:[%s1109_s1 + $0x8] sm:$0xff] (!%p221_p9)  ;;  %v261_v2 = vld [vmem:[%s1109_s1 + $0x10] sm:$0xff] (!%p221_p9)  ;;  %v843_v3 = vmov (!%p221_p9), 0.0|0.0   ;;  %vm844_vm0 = vmmov (!%p221_p9), 0   ;;  %v845_v6 = vmov (!%p221_p9), 0.0  }
  0x10   : > { %224 = sbr.rel (%p221_p9) target bundleno = 477 (0x1dd), region = 40  ;;  %664 = vmatprep.subr.bf16.mxu0 (!%p221_p9), %v843_v3  ;;  %v665_v4 = vpack.c.bf16 (!%p221_p9), %v260_v1, %v259_v0  ;;  %v262_v5 = vld [vmem:[%s1109_s1 + $0x18] sm:$0xff] (!%p221_p9)  ;;  %626 = vmatprep.mubr.msk.f32.mxu0 (!%p221_p9), %vm844_vm0, %v845_v6  ;;  %p254_p10 = scmp.lt.s32.totalorder (!%p221_p9), %s904_s25, 1  ;;  %v349_v7 = vld [vmem:[%s1111_s3] sm:$0xff] (!%p221_p9)  ;;  %v350_v9 = vld [vmem:[%s1111_s3 + $0x8] sm:$0xff] (!%p221_p9)  ;;  %vm274_vm1 = vcmask (!%p221_p9), 523264  }
  0x11   : > { %676 = vmatprep.subr.bf16.mxu1 (!%p221_p9), %v843_v3  ;;  %661 = vmatprep.mubr.msk.f32.mxu1 (!%p221_p9), %vm844_vm0, %v845_v6  ;;  %v668_v8 = vpack.c.bf16 (!%p221_p9), %v262_v5, %v261_v2  ;;  %v351_v10 = vld [vmem:[%s1111_s3 + $0x10] sm:$0xff] (!%p221_p9)  ;;  %v352_v11 = vld [vmem:[%s1111_s3 + $0x18] sm:$0xff] (!%p221_p9)  ;;  %v263_v12 = vld [vmem:[%s1109_s1 + $0x20] sm:$0xff] (!%p221_p9)  ;;  %v677_v14 = vpack.c.bf16 (!%p221_p9), %v350_v9, %v349_v7  ;;  %s1021_s17 = sand.u32 (!%p221_p9), 1, %s833_s22   ;;  %s580_s28 = sshll.u32 (!%p221_p9), %s904_s25, 7 }
  0x12   : > { %666 = vmatpush3.bf16.msra.mxu0 (!%p221_p9), %v665_v4  ;;  %v264_v13 = vld [vmem:[%s1109_s1 + $0x28] sm:$0xff] (!%p221_p9)  ;;  %v680_v15 = vpack.c.bf16 (!%p221_p9), %v352_v11, %v351_v10  ;;  %v353_v17 = vld [vmem:[%s1111_s3 + $0x20] sm:$0xff] (!%p221_p9)  ;;  %v265_v19 = vld [vmem:[%s1109_s1 + $0x30] sm:$0xff] (!%p221_p9)  ;;  %s572_s20 = sshll.u32 (!%p221_p9), %s1021_s17, 3  ;;  %s1035_s10 = scalar_lea.hbm (!%p221_p9), %s1114_s6, %s580_s28 }
  0x13   : > { %667 = vmatprep.subr.bf16.mxu0 (!%p221_p9), %v843_v3  ;;  %678 = vmatpush3.bf16.msra.mxu1 (!%p221_p9), %v677_v14  ;;  %v671_v16 = vpack.c.bf16 (!%p221_p9), %v264_v13, %v263_v12  ;;  %v354_v18 = vld [vmem:[%s1111_s3 + $0x28] sm:$0xff] (!%p221_p9)  ;;  %v266_v20 = vld [vmem:[%s1109_s1 + $0x38] sm:$0xff] (!%p221_p9)  ;;  %v355_v23 = vld [vmem:[%s1111_s3 + $0x30] sm:$0xff] (!%p221_p9)  ;;  %s253_s26 = scalar_lea.vmem (!%p221_p9), [#allocation4], %s572_s20  ;;  %s451_s12 = scalar_lea.sflag (!%p221_p9), [#allocation5], %s1021_s17 }
  0x14   : > { %679 = vmatprep.subr.bf16.mxu1 (!%p221_p9), %v843_v3  ;;  %v683_v21 = vpack.c.bf16 (!%p221_p9), %v354_v18, %v353_v17  ;;  %v674_v22 = vpack.c.bf16 (!%p221_p9), %v266_v20, %v265_v19  ;;  %v356_v24 = vld [vmem:[%s1111_s3 + $0x38] sm:$0xff] (!%p221_p9)  ;;  %v357_v27 = vld [vmem:[%s1111_s3 + $0x40] sm:$0xff] (!%p221_p9)  ;;  %v358_v28 = vld [vmem:[%s1111_s3 + $0x48] sm:$0xff] (!%p221_p9)  ;;  %s477_s11 = sshll.u32 (!%p221_p9), %s253_s26, 4  ;;  %s846_s15 = smov (!%p221_p9), [#allocation4]   ;;  %s478_s11 = int_to_ptr.vmem [resolvable:$true] %s477_s11 }
  0x15   : > { %v686_v25 = vpack.c.bf16 (!%p221_p9), %v356_v24, %v355_v23  ;;  %v689_v29 = vpack.c.bf16 (!%p221_p9), %v358_v28, %v357_v27  ;;  %v359_v30 = vld [vmem:[%s1111_s3 + $0x50] sm:$0xff] (!%p221_p9)  ;;  %v360_v31 = vld [vmem:[%s1111_s3 + $0x58] sm:$0xff] (!%p221_p9)  ;;  %v361_v33 = vld [vmem:[%s1111_s3 + $0x60] sm:$0xff] (!%p221_p9)  ;;  %s747_s13 = scalar_lea.vmem (!%p221_p9), %s478_s11, 128 }
  0x16   : > { %669 = vmatpush3.bf16.msra.mxu0 (!%p221_p9), %v668_v8  ;;  %v692_v32 = vpack.c.bf16 (!%p221_p9), %v360_v31, %v359_v30  ;;  %v362_v34 = vld [vmem:[%s1111_s3 + $0x68] sm:$0xff] (!%p221_p9)  ;;  %v363_v36 = vld [vmem:[%s1111_s3 + $0x70] sm:$0xff] (!%p221_p9)  ;;  %v364_v37 = vld [vmem:[%s1111_s3 + $0x78] sm:$0xff] (!%p221_p9)  ;;  %p748_p11 = scmp.ne.s32.totalorder (!%p221_p9), %s478_s11, %s747_s13 }
  0x17   : > { %s255_s14 = scalar_select %p254_p10, %s904_s25, 1  ;;  %670 = vmatprep.subr.bf16.mxu0 %v843_v3  ;;  %681 = vmatpush3.bf16.msra.mxu1 %v680_v15  ;;  %v695_v35 = vpack.c.bf16 %v362_v34, %v361_v33  ;;  %v698_v38 = vpack.c.bf16 %v364_v37, %v363_v36  ;;  %v575_v39 = vld [vmem:[%s1110_s2] ss:$0 sm:$0xff] }
  0x18   : > { %682 = vmatprep.subr.bf16.mxu1 %v843_v3  ;;  %p749_p12 = pnand %p748_p11, %p921_p5 }
  0x19   : > { %s574_s29 = sshll.u32 %s255_s14, 3 }
  0x1a   : > { %672 = vmatpush3.bf16.msra.mxu0 %v671_v16  ;;  %s257_s14 = scalar_lea.vmem %s1108_s0, %s574_s29  ;;  %p750_p13 = pneg %p749_p12 }
  0x1b   : > { %673 = vmatprep.subr.bf16.mxu0 %v843_v3  ;;  %684 = vmatpush3.bf16.msra.mxu1 %v683_v21  ;;  %v258_v26 = vld [vmem:[%s257_s14] sm:$0xff]  ;;  %s751_s14 = sshll.u32 %s846_s15, 4  ;;  %s752_s14 = int_to_ptr.vmem [resolvable:$false] %s751_s14 }
  0x1c   : > { %685 = vmatprep.subr.bf16.mxu1 %v843_v3  ;;  %s753_s16 = scalar_lea.vmem %s752_s14, 256  ;;  %p754_p0 = scmp.lt.s32.totalorder %s478_s11, %s752_s14 }
  0x1d   : > { %p755_p1 = scmp.lt.s32.totalorder %s753_s16, %s747_s13 }
  0x1e   : > { %675 = vmatpush3.bf16.msra.mxu0 %v674_v22 }
  0x1f   : > { %687 = vmatpush3.bf16.msra.mxu1 %v686_v25  ;;  %p756_p2 = por %p755_p1, %p754_p0 }
  0x20   : > { %688 = vmatprep.subr.bf16.mxu1 %v843_v3 }
  0x21   : > { %627 = vmatmul.mubr.msk.f32.vlgmr.msra.gmra.mrb[0].mxu0 %vm274_vm1, %v258_v26  ;;  %p757_p3 = pnand %p756_p2, %p750_p13 }
  0x23   : > { %690 = vmatpush3.bf16.msra.mxu1 %v689_v29 }
  0x24   : > { %691 = vmatprep.subr.bf16.mxu1 %v843_v3 }
  0x27   : > { %693 = vmatpush3.bf16.msra.mxu1 %v692_v32 }
  0x28   : > { %694 = vmatprep.subr.bf16.mxu1 %v843_v3 }
  0x2b   : > { %696 = vmatpush3.bf16.msra.mxu1 %v695_v35 }
  0x2c   : > { %697 = vmatprep.subr.bf16.mxu1 %v843_v3 }
  0x2f   : > { %699 = vmatpush3.bf16.msra.mxu1 %v698_v38 }
  0xf4   : > { %v344_v40 = vpop.f32.mrb[0].mxu0 }
  0xf5   : > { %v345_v41 = vadd.f32 %v575_v39, %v344_v40  ;;  %v628_v42 = vpop.f32.mrb[1].mxu0 }
  0xf7   : > { %v348_v43 = vmax.f32 %v345_v41, 0.0 }
  0xf9   : > { %442 = vst [vmem:[%s253_s26] sm:$0xff] %v348_v43  ;;  %662 = vmatmul.mubr.f32.vlgmr.msra.gmra.mrb[0].mxu1 %v348_v43 }
  0xfa   : > { %760 = shalt.err (!%p757_p3)
}
  0xfb   : > { %s761_s18 = scalar_lea.hbm %s1035_s10, 128  ;;  %s765_s29 = scalar_lea.hbm %s1114_s6, 256 }
  0xfc   : > { %p762_p4 = scmp.ne.s32.totalorder %s1035_s10, %s761_s18  ;;  %p766_p9 = scmp.lt.u32.totalorder %s1035_s10, %s1114_s6 }
  0xfd   : > { %p767_p10 = scmp.lt.u32.totalorder %s765_s29, %s761_s18  ;;  %p769_p12 = scmp.lt.u32.totalorder %s761_s18, %s1035_s10 }
  0xfe   : > { %p763_p7 = pnand %p762_p4, %p921_p5 }
  0xff   : > { %p768_p11 = por %p767_p10, %p766_p9 }
 0x100   : > { %p764_p8 = pneg %p763_p7 }
 0x101   : > { %p770_p13 = por %p769_p12, %p768_p11 }
 0x103   : > { %p771_p0 = pnand %p770_p13, %p764_p8 }
 0x105   : > { %774 = shalt.err (!%p771_p0)
}
 0x106   : > { %701 = dma.vmem_to_hbm [thread:$0]  (%p921_p5), %s478_s11, 128, %s1035_s10, %s451_s12   ;;  %v577_v44 = vld [vmem:[%s1112_s4] ss:$0 sm:$0xff]  ;;  %vm443_vm2 = vcmask 80896  }
 0x107   : > { %s246_s16 = scalar_lea.vmem [#allocation2], %s572_s20  ;;  %s1065_s29 = scalar_lea.hbm %s1113_s5, %s580_s28 }
 0x108   : > { %s464_s19 = sshll.u32 %s246_s16, 4  ;;  %s446_s10 = scalar_lea.sflag [#allocation3], %s1021_s17  ;;  %s1067_s19 = int_to_ptr.vmem [resolvable:$true] %s464_s19 }
 0x109   : > { %s775_s11 = scalar_lea.vmem %s1067_s19, 128  ;;  %s847_s20 = smov [#allocation2]  }
 0x10a   : > { %p776_p1 = scmp.ne.s32.totalorder %s1067_s19, %s775_s11  ;;  %s779_s12 = sshll.u32 %s847_s20, 4  ;;  %s780_s12 = int_to_ptr.vmem [resolvable:$false] %s779_s12 }
 0x10b   : > { %s781_s25 = scalar_lea.vmem %s780_s12, 256  ;;  %p782_p4 = scmp.lt.s32.totalorder %s1067_s19, %s780_s12 }
 0x10c   : > { %p777_p2 = pnand %p776_p1, %p921_p5  ;;  %p783_p7 = scmp.lt.s32.totalorder %s781_s25, %s775_s11 }
 0x10e   : > { %p778_p3 = pneg %p777_p2  ;;  %p784_p8 = por %p783_p7, %p782_p4 }
 0x110   : > { %p785_p9 = pnand %p784_p8, %p778_p3 }
 0x1cc   : > { %v438_v45 = vpop.f32.mrb[0].mxu1 }
 0x1cd   : > { %v439_v46 = vadd.f32 %v577_v44, %v438_v45  ;;  %v663_v47 = vpop.f32.mrb[1].mxu1 }
 0x1cf   : > { %444 = vst.msk [vmem:[%s246_s16] sm:$0xff] %vm443_vm2, %v439_v46 }
 0x1d0   : > { %788 = shalt.err (!%p785_p9)
}
 0x1d1   : > { %s789_s17 = scalar_lea.hbm %s1065_s29, 128  ;;  %s793_s15 = scalar_lea.hbm %s1113_s5, 256 }
 0x1d2   : > { %p790_p10 = scmp.ne.s32.totalorder %s1065_s29, %s789_s17  ;;  %p794_p13 = scmp.lt.u32.totalorder %s1065_s29, %s1113_s5 }
 0x1d3   : > { %p795_p0 = scmp.lt.u32.totalorder %s793_s15, %s789_s17  ;;  %p797_p2 = scmp.lt.u32.totalorder %s789_s17, %s1065_s29 }
 0x1d4   : > { %p791_p11 = pnand %p790_p10, %p921_p5 }
 0x1d5   : > { %p796_p1 = por %p795_p0, %p794_p13 }
 0x1d6   : > { %p792_p12 = pneg %p791_p11 }
 0x1d7   : > { %p798_p3 = por %p797_p2, %p796_p1 }
 0x1d9   : > { %p799_p4 = pnand %p798_p3, %p792_p12 }
 0x1db   : > { %802 = shalt.err (!%p799_p4)
}
 0x1dc   : > { %700 = dma.vmem_to_hbm [thread:$0]  (%p921_p5), %s1067_s19, 128, %s1065_s29, %s446_s10  }
 0x1dd PF: > { %p711_p7 = scmp.ge.s32.totalorder %s841_s24, 2  ;;  %s489_s16 = sand.u32 1, %s829_s21  }
 0x1de   : > { %s490_s18 = scalar_lea.sflag [#allocation3], %s489_s16 }
 0x1df   : > { %p705_p8 = pnand %p711_p7, %p925_p6 }
 0x1e1   : > { %820 = dma.done.wait (!%p705_p8), %s490_s18, 128  }
 0x1e2   : > { %822 = vsyncadd (!%p705_p8), %s490_s18, 4294967168  ;;  %s499_s26 = scalar_lea.sflag [#allocation5], %s489_s16 }
 0x1e3   : > { %824 = dma.done.wait (!%p705_p8), %s499_s26, 128  }
 0x1e4   : > { %826 = vsyncadd (!%p705_p8), %s499_s26, 4294967168  ;;  %p20_p5 = scmp.ge.s32.totalorder %s908_s27, 4   ;;  %s1117_s21 = smov %s833_s22 }
 0x1e5   : > { %s1118_s22 = smov %s837_s23  ;;  %s1119_s23 = smov %s919_s30 }
 0x1e6   : > { %s1120_s24 = smov %s908_s27  ;;  %22 = sbr.rel (!%p20_p5) target bundleno = 5 (0x5), region = 92 }
 0x1ed   :  { %504 = vsyncpa [#allocation3], 1 }
 0x1ee   :  { %506 = vsyncpa [#allocation3 + $0x1], 1 }
 0x1ef   :  { %507 = vsyncpa [#allocation5], 1 }
 0x1f0   :  { %509 = vsyncpa [#allocation5 + $0x1], 1 }

</bundles_post_ra>
